<compile_context>
chip_gen: v6e
topology: v6e:2x2x1
jax: 0.10.0
libtpu: 0.0.40
codegen_flags: <defaults>
</compile_context>

<pallas_src>
import jax
import jax.numpy as jnp
from jax.experimental import pallas as pl
from jax.experimental.pallas import tpu as pltpu


def _round_up(x, m):
    return ((x + m - 1) // m) * m


def _mlp_block_kernel(x_ref, w1t_ref, b1_ref, w2t_ref, b2_ref, o_ref):
    # x_ref:   (TB, in_dim)        bf16
    # w1t_ref: (in_dim, hidden)    bf16      b1_ref: (1, hidden)   f32
    # w2t_ref: (hidden, out_pad)   bf16      b2_ref: (1, out_pad)  f32
    # o_ref:   (TB, out_pad)       f32 (lane-dense, out_pad % 128 == 0)
    x = x_ref[...]

    # Linear 1 + ReLU  (MXU matmul, f32 accumulation; epilogue in f32)
    h = jnp.dot(x, w1t_ref[...], preferred_element_type=jnp.float32)
    h = jnp.maximum(h + b1_ref[...], 0.0)

    # Deliberate mixed-precision downcast for the second MXU matmul.
    h = h.astype(jnp.bfloat16)

    # Linear 2 (f32 accumulation) + bias
    y = jnp.dot(h, w2t_ref[...], preferred_element_type=jnp.float32)
    y = y + b2_ref[...]

    # Sigmoid via tanh: sigmoid(y) = 0.5 * tanh(0.5*y) + 0.5  (EUP slot)
    o_ref[...] = (0.5 * jnp.tanh(0.5 * y) + 0.5).astype(o_ref.dtype)


def mlp_block_forward(x, w1, b1, w2, b2, *, tile_b=512):
    """x: [B, in_dim]; w1: [hidden, in_dim]; b1: [hidden]; w2: [out_dim, hidden]; b2: [out_dim]."""
    B, in_dim = x.shape
    hidden = w1.shape[0]
    out_dim = w2.shape[0]
    out_dtype = x.dtype

    # ---- batch tiling: multiple of 16 (bf16 (16,128) packing), pad B up ----
    tile_b = max(16, min(_round_up(tile_b, 16), _round_up(B, 16)))
    Bp = _round_up(B, tile_b)

    # ---- lane-dense output: pad out_dim up to a multiple of 128 ----
    out_pad = _round_up(max(out_dim, 128), 128)

    # ---- operand prep (bf16 matmul operands, f32 biases) ----
    xp = x
    if Bp != B:
        xp = jnp.pad(xp, ((0, Bp - B), (0, 0)))
    x_bf = xp.astype(jnp.bfloat16)

    w1t = w1.T.astype(jnp.bfloat16)                       # (in_dim, hidden)
    w2t = jnp.pad(w2.T, ((0, 0), (0, out_pad - out_dim))  # (hidden, out_pad)
                  ).astype(jnp.bfloat16)
    b1r = b1.reshape(1, hidden).astype(jnp.float32)
    b2r = jnp.pad(b2.reshape(1, out_dim),
                  ((0, 0), (0, out_pad - out_dim))).astype(jnp.float32)

    grid = (Bp // tile_b,)

    out_padded = pl.pallas_call(
        _mlp_block_kernel,
        out_shape=jax.ShapeDtypeStruct((Bp, out_pad), out_dtype),
        grid_spec=pl.GridSpec(
            grid=grid,
            in_specs=[
                pl.BlockSpec((tile_b, in_dim), lambda i: (i, 0)),
                pl.BlockSpec((in_dim, hidden), lambda i: (0, 0)),
                pl.BlockSpec((1, hidden), lambda i: (0, 0)),
                pl.BlockSpec((hidden, out_pad), lambda i: (0, 0)),
                pl.BlockSpec((1, out_pad), lambda i: (0, 0)),
            ],
            out_specs=pl.BlockSpec((tile_b, out_pad), lambda i: (i, 0)),
        ),
        compiler_params=pltpu.CompilerParams(
            dimension_semantics=("parallel",),
            vmem_limit_bytes=32 * 1024 * 1024,
        ),
    )(x_bf, w1t, b1r, w2t, b2r)

    # Strip batch + lane padding outside the kernel.
    return out_padded[:B, :out_dim]


def _reference_f32(x, w1, b1, w2, b2):
    h = jnp.maximum(x @ w1.T + b1, 0.0)
    y = h @ w2.T + b2
    return jax.nn.sigmoid(y)


if __name__ == "__main__":
    # Small shapes consistent with the module: batch=8, in_dim=32, out_dim=16,
    # hidden=128 fixed by MLP_block.
    B, in_dim, hidden, out_dim = 8, 32, 128, 16

    key = jax.random.PRNGKey(0)
    k_x, k_w1, k_b1, k_w2, k_b2 = jax.random.split(key, 5)

    x = jax.random.normal(k_x, (B, in_dim), dtype=jnp.float32)
    # Deterministic synthetic parameters (nn.Linear-like scale).
    w1 = jax.random.normal(k_w1, (hidden, in_dim), dtype=jnp.float32) * (1.0 / jnp.sqrt(in_dim))
    b1 = jax.random.normal(k_b1, (hidden,), dtype=jnp.float32) * 0.01
    w2 = jax.random.normal(k_w2, (out_dim, hidden), dtype=jnp.float32) * (1.0 / jnp.sqrt(hidden))
    b2 = jax.random.normal(k_b2, (out_dim,), dtype=jnp.float32) * 0.01

    out = mlp_block_forward(x, w1, b1, w2, b2)
    out = jax.block_until_ready(out)

    ref = _reference_f32(x, w1, b1, w2, b2)
    assert out.shape == (B, out_dim)
    # bf16 matmul operands -> loose tolerance vs the pure-f32 reference.
    assert jnp.allclose(out, ref, atol=2e-2, rtol=2e-2), "mismatch vs reference"

    print("KERNEL_OK")
</pallas_src>

<mosaic_0001>
module attributes {stable_mosaic.version = 11 : i64} {
  func.func @_mlp_block_kernel(%arg0: i32, %arg1: memref<16x32xbf16, #tpu.memory_space<vmem>>, %arg2: memref<32x128xbf16, #tpu.memory_space<vmem>>, %arg3: memref<1x128xf32, #tpu.memory_space<vmem>>, %arg4: memref<128x128xbf16, #tpu.memory_space<vmem>>, %arg5: memref<1x128xf32, #tpu.memory_space<vmem>>, %arg6: memref<16x128xf32, #tpu.memory_space<vmem>>) attributes {dimension_semantics = [#tpu.dimension_semantics<parallel>], iteration_bounds = array<i64: 1>, scalar_prefetch = 0 : i64, scratch_operands = 0 : i64, tpu.core_type = #tpu.core_type<tc>, window_params = [{transform_indices = @transform_0, window_bounds = array<i64: 16, 32>}, {pipeline_mode = #tpu.pipeline_mode<synchronous>, transform_indices = @transform_1, window_bounds = array<i64: 32, 128>}, {pipeline_mode = #tpu.pipeline_mode<synchronous>, transform_indices = @transform_2, window_bounds = array<i64: 1, 128>}, {pipeline_mode = #tpu.pipeline_mode<synchronous>, transform_indices = @transform_3, window_bounds = array<i64: 128, 128>}, {pipeline_mode = #tpu.pipeline_mode<synchronous>, transform_indices = @transform_4, window_bounds = array<i64: 1, 128>}, {transform_indices = @transform_5, window_bounds = array<i64: 16, 128>}]} {
    %c0 = arith.constant 0 : index
    %c0_0 = arith.constant 0 : index
    %0 = vector.load %arg1[%c0, %c0_0] : memref<16x32xbf16, #tpu.memory_space<vmem>>, vector<16x32xbf16>
    %c0_1 = arith.constant 0 : index
    %c0_2 = arith.constant 0 : index
    %1 = vector.load %arg2[%c0_1, %c0_2] : memref<32x128xbf16, #tpu.memory_space<vmem>>, vector<32x128xbf16>
    %cst = arith.constant dense<0.000000e+00> : vector<16x128xf32>
    %2 = tpu.matmul %0, %1, %cst {dimension_numbers = #tpu.dot_dimension_numbers<[1], [0], [0], [1], [0, 0, 1, 1], [], []>} : vector<16x32xbf16>, vector<32x128xbf16>, vector<16x128xf32> -> vector<16x128xf32>
    %c0_3 = arith.constant 0 : index
    %c0_4 = arith.constant 0 : index
    %3 = vector.load %arg3[%c0_3, %c0_4] : memref<1x128xf32, #tpu.memory_space<vmem>>, vector<1x128xf32>
    %4 = vector.broadcast %3 : vector<1x128xf32> to vector<16x128xf32>
    %5 = arith.addf %2, %4 : vector<16x128xf32>
    %cst_5 = arith.constant 0.000000e+00 : f32
    %6 = vector.broadcast %cst_5 : f32 to vector<16x128xf32>
    %7 = arith.maximumf %5, %6 : vector<16x128xf32>
    %8 = arith.truncf %7 : vector<16x128xf32> to vector<16x128xbf16>
    %c0_6 = arith.constant 0 : index
    %c0_7 = arith.constant 0 : index
    %9 = vector.load %arg4[%c0_6, %c0_7] : memref<128x128xbf16, #tpu.memory_space<vmem>>, vector<128x128xbf16>
    %cst_8 = arith.constant dense<0.000000e+00> : vector<16x128xf32>
    %10 = tpu.matmul %8, %9, %cst_8 {dimension_numbers = #tpu.dot_dimension_numbers<[1], [0], [0], [1], [0, 0, 1, 1], [], []>} : vector<16x128xbf16>, vector<128x128xbf16>, vector<16x128xf32> -> vector<16x128xf32>
    %c0_9 = arith.constant 0 : index
    %c0_10 = arith.constant 0 : index
    %11 = vector.load %arg5[%c0_9, %c0_10] : memref<1x128xf32, #tpu.memory_space<vmem>>, vector<1x128xf32>
    %12 = vector.broadcast %11 : vector<1x128xf32> to vector<16x128xf32>
    %13 = arith.addf %10, %12 : vector<16x128xf32>
    %cst_11 = arith.constant 5.000000e-01 : f32
    %14 = vector.broadcast %cst_11 : f32 to vector<16x128xf32>
    %15 = arith.mulf %14, %13 : vector<16x128xf32>
    %16 = math.tanh %15 : vector<16x128xf32>
    %cst_12 = arith.constant 5.000000e-01 : f32
    %17 = vector.broadcast %cst_12 : f32 to vector<16x128xf32>
    %18 = arith.mulf %17, %16 : vector<16x128xf32>
    %cst_13 = arith.constant 5.000000e-01 : f32
    %19 = vector.broadcast %cst_13 : f32 to vector<16x128xf32>
    %20 = arith.addf %18, %19 : vector<16x128xf32>
    %c0_14 = arith.constant 0 : index
    %c0_15 = arith.constant 0 : index
    %21 = vector.load %arg6[%c0_14, %c0_15] : memref<16x128xf32, #tpu.memory_space<vmem>>, vector<16x128xf32>
    tpu.vector_store %arg6[%c0_14, %c0_15], %20 {strides = array<i32>} : memref<16x128xf32, #tpu.memory_space<vmem>>, vector<16x128xf32>,
    return
  }
  func.func @transform_0(%arg0: i32) -> (i32, i32) {
    %c0_i32 = arith.constant 0 : i32
    %c0_i32_0 = arith.constant 0 : i32
    return %arg0, %c0_i32 : i32, i32
  }
  func.func @transform_1(%arg0: i32) -> (i32, i32) {
    %c0_i32 = arith.constant 0 : i32
    %c0_i32_0 = arith.constant 0 : i32
    %c0_i32_1 = arith.constant 0 : i32
    return %c0_i32, %c0_i32_0 : i32, i32
  }
  func.func @transform_2(%arg0: i32) -> (i32, i32) {
    %c0_i32 = arith.constant 0 : i32
    %c0_i32_0 = arith.constant 0 : i32
    %c0_i32_1 = arith.constant 0 : i32
    return %c0_i32, %c0_i32_0 : i32, i32
  }
  func.func @transform_3(%arg0: i32) -> (i32, i32) {
    %c0_i32 = arith.constant 0 : i32
    %c0_i32_0 = arith.constant 0 : i32
    %c0_i32_1 = arith.constant 0 : i32
    return %c0_i32, %c0_i32_0 : i32, i32
  }
  func.func @transform_4(%arg0: i32) -> (i32, i32) {
    %c0_i32 = arith.constant 0 : i32
    %c0_i32_0 = arith.constant 0 : i32
    %c0_i32_1 = arith.constant 0 : i32
    return %c0_i32, %c0_i32_0 : i32, i32
  }
  func.func @transform_5(%arg0: i32) -> (i32, i32) {
    %c0_i32 = arith.constant 0 : i32
    %c0_i32_0 = arith.constant 0 : i32
    return %arg0, %c0_i32 : i32, i32
  }
}

</mosaic_0001>

<bundles_post_ra>
// kernel: tpu_custom_call.1
= control target key start
LH: loop header
LB: loop body
LE: loop exit
PB: predicated region body
PF: predicated region fallthrough
CT: control target
= control target key end

     0   :  { %10 = vsyncpa [#allocation3], 0  ;;  %s504_s0 = inlined_call_operand.hbm [shape: bf16[16,32], index: 0, kind: input, shape index: {}]   ;;  %s505_s1 = inlined_call_operand.hbm [shape: bf16[32,128], index: 1, kind: input, shape index: {}]   ;;  %s506_s2 = inlined_call_operand.vmem [shape: f32[1,128], index: 2, kind: input, shape index: {}]   ;;  %s507_s3 = inlined_call_operand.hbm [shape: bf16[128,128], index: 3, kind: input, shape index: {}]   ;;  %s508_s4 = inlined_call_operand.vmem [shape: f32[1,128], index: 4, kind: input, shape index: {}]   ;;  %s509_s5 = inlined_call_operand.hbm [shape: f32[16,128], index: 5, kind: output, shape index: {}]  }
   0x1   :  { %11 = vsyncpa [#allocation6], 0 }
   0x2   :  { %12 = vsyncpa [#allocation4], 0  ;;  %s446_s18 = smov [#allocation5]   ;;  %s447_s20 = smov [#allocation2]  }
   0x3   :  { %s30_s19 = sshll.u32 %s446_s18, 4  ;;  %s18_s21 = sshll.u32 %s447_s20, 4  ;;  %s31_s19 = int_to_ptr.vmem [resolvable:$true] %s30_s19  ;;  %s19_s21 = int_to_ptr.vmem [resolvable:$true] %s18_s21 }
   0x4   :  { %s368_s22 = scalar_lea.vmem %s31_s19, 256  ;;  %p373_p1 = scmp.lt.s32.totalorder %s31_s19, %s31_s19 }
   0x5   :  { %p369_p0 = scmp.ne.s32.totalorder %s31_s19, %s368_s22  ;;  %p374_p2 = scmp.lt.s32.totalorder %s368_s22, %s368_s22 }
   0x7   :  { %p375_p3 = por %p374_p2, %p373_p1 }
   0x9   :  { %p376_p4 = pnand %p375_p3, %p369_p0 }
   0xb   :  { %379 = shalt.err (!%p376_p4)
}
   0xc   :  { %s448_s23 = smov 64   ;;  %s449_s24 = smov 4  }
   0xd   :  { %36 = dma.hbm_to_vmem [thread:$0]  %s505_s1, 256, %s31_s19, [#allocation6], %s448_s23, %s448_s23, %s449_s24  }
   0xe   :  { %s388_s27 = scalar_lea.vmem %s19_s21, 128  ;;  %p393_p6 = scmp.lt.s32.totalorder %s19_s21, %s19_s21 }
   0xf   :  { %p389_p5 = scmp.ne.s32.totalorder %s19_s21, %s388_s27  ;;  %p394_p7 = scmp.lt.s32.totalorder %s388_s27, %s388_s27 }
  0x11   :  { %p395_p8 = por %p394_p7, %p393_p6 }
  0x13   :  { %p396_p9 = pnand %p395_p8, %p389_p5 }
  0x15   :  { %399 = shalt.err (!%p396_p9)
}
  0x16   :  { %24 = dma.hbm_to_vmem [thread:$0]  %s504_s0, 128, %s19_s21, [#allocation3], %s448_s23, %s448_s23, %s449_s24  }
  0x17   :  { %s450_s30 = smov [#allocation7]  }
  0x18   :  { %s44_s6 = sshll.u32 %s450_s30, 4  ;;  %s45_s6 = int_to_ptr.vmem [resolvable:$true] %s44_s6 }
  0x19   :  { %s408_s7 = scalar_lea.vmem %s45_s6, 1024  ;;  %p413_p11 = scmp.lt.s32.totalorder %s45_s6, %s45_s6 }
  0x1a   :  { %p409_p10 = scmp.ne.s32.totalorder %s45_s6, %s408_s7  ;;  %p414_p12 = scmp.lt.s32.totalorder %s408_s7, %s408_s7 }
  0x1c   :  { %p415_p13 = por %p414_p12, %p413_p11 }
  0x1e   :  { %p416_p0 = pnand %p415_p13, %p409_p10 }
  0x20   :  { %419 = shalt.err (!%p416_p0)
}
  0x21   :  { %50 = dma.hbm_to_vmem [thread:$0]  %s507_s3, 1024, %s45_s6, [#allocation6], %s448_s23, %s448_s23, %s449_s24  }
  0x22   :  { %440 = dma.done.wait [#allocation3], 128  }
  0x23   :  { %441 = vsyncadd [#allocation3], 4294967168 }
  0x24   :  { %442 = dma.done.wait [#allocation6], 1280  }
  0x25   :  { %443 = vsyncadd [#allocation6], 4294966016  ;;  %v451_v0 = vmov 0.0   ;;  %vm452_vm0 = vmmov 0   ;;  %v345_v1 = vld [vmem:[#allocation5 + $0x8] sm:$0xff]   ;;  %v346_v2 = vld [vmem:[#allocation5] sm:$0xff]  }
  0x26   :  { %307 = vmatprep.subr.bf16.mxu0 %v451_v0  ;;  %311 = vmatprep.mubr.msk.bf16.mxu0 %vm452_vm0, %v451_v0  ;;  %v348_v3 = vld [vmem:[#allocation7 + $0x38] sm:$0xff]   ;;  %v347_v4 = vld [vmem:[#allocation2] sm:$0xff]   ;;  %v349_v5 = vld [vmem:[#allocation7 + $0x30] sm:$0xff]   ;;  %vm93_vm1 = vcmask 261120  }
  0x27   :  { %315 = vmatprep.subr.bf16.mxu1 %v451_v0  ;;  %331 = vmatprep.mubr.msk.bf16.mxu1 %vm452_vm0, %v451_v0  ;;  %v350_v6 = vld [vmem:[#allocation7 + $0x28] sm:$0xff]   ;;  %v351_v7 = vld [vmem:[#allocation7 + $0x20] sm:$0xff]   ;;  %v352_v8 = vld [vmem:[#allocation7 + $0x18] sm:$0xff]  }
  0x28   :  { %308 = vmatpush3.bf16.msra.mxu0 %v345_v1  ;;  %316 = vmatpush3.bf16.msra.mxu1 %v348_v3  ;;  %v353_v9 = vld [vmem:[#allocation7 + $0x10] sm:$0xff]   ;;  %v354_v10 = vld [vmem:[#allocation7 + $0x8] sm:$0xff]   ;;  %v355_v11 = vld [vmem:[#allocation7] sm:$0xff]  }
  0x29   :  { %309 = vmatprep.subr.bf16.mxu0 %v451_v0  ;;  %317 = vmatprep.subr.bf16.mxu1 %v451_v0  ;;  %v281_v12 = vld [vmem:[%s506_s2] ss:$0 sm:$0xff]  ;;  %s453_s2 = smov [#allocation8]  }
  0x2a   :  { %v286_v22 = vld [vmem:[%s508_s4] ss:$0 sm:$0xff]  ;;  %s268_s11 = sshll.u32 %s453_s2, 4  ;;  %s269_s11 = int_to_ptr.vmem [resolvable:$true] %s268_s11 }
  0x2b   :  { %s420_s4 = scalar_lea.vmem %s269_s11, 256  ;;  %p425_p2 = scmp.lt.s32.totalorder %s269_s11, %s269_s11 }
  0x2c   :  { %310 = vmatpush3.bf16.msra.mxu0 %v346_v2  ;;  %318 = vmatpush3.bf16.msra.mxu1 %v349_v5  ;;  %p421_p1 = scmp.ne.s32.totalorder %s269_s11, %s420_s4  ;;  %p426_p3 = scmp.lt.s32.totalorder %s420_s4, %s420_s4 }
  0x2d   :  { %319 = vmatprep.subr.bf16.mxu1 %v451_v0 }
  0x2e   :  { %p427_p4 = por %p426_p3, %p425_p2 }
  0x2f   :  { %312 = vmatmul.mubr.msk.bf16.vlgmr.msra.gmra.mxu0 %vm93_vm1, %v347_v4 }
  0x30   :  { %320 = vmatpush3.bf16.msra.mxu1 %v350_v6  ;;  %p428_p5 = pnand %p427_p4, %p421_p1 }
  0x31   :  { %321 = vmatprep.subr.bf16.mxu1 %v451_v0 }
  0x34   :  { %322 = vmatpush3.bf16.msra.mxu1 %v351_v7 }
  0x35   :  { %323 = vmatprep.subr.bf16.mxu1 %v451_v0 }
  0x38   :  { %324 = vmatpush3.bf16.msra.mxu1 %v352_v8 }
  0x39   :  { %325 = vmatprep.subr.bf16.mxu1 %v451_v0 }
  0x3c   :  { %326 = vmatpush3.bf16.msra.mxu1 %v353_v9 }
  0x3d   :  { %327 = vmatprep.subr.bf16.mxu1 %v451_v0 }
  0x40   :  { %328 = vmatpush3.bf16.msra.mxu1 %v354_v10 }
  0x41   :  { %329 = vmatprep.subr.bf16.mxu1 %v451_v0 }
  0x44   :  { %330 = vmatpush3.bf16.msra.mxu1 %v355_v11 }
  0xef   :  { %v131_v13 = vpop.f32.mrf.mxu0 }
  0xf0   :  { %v132_v15 = vadd.f32 %v281_v12, %v131_v13 }
  0xf1   :  { %v313_v14 = vpop.f32.mrf.mxu0 }
  0xf2   :  { %v138_v19 = vmax.f32 %v132_v15, 0.0 }
  0xf3   :  { %v134_v16 = vpop.f32.mrf.mxu0 }
  0xf4   :  { %v135_v17 = vadd.f32 %v281_v12, %v134_v16 }
  0xf5   :  { %v314_v18 = vpop.f32.mrf.mxu0 }
  0xf6   :  { %v139_v20 = vmax.f32 %v135_v17, 0.0 }
  0xf8   :  { %v140_v21 = vpack.c.bf16 %v139_v20, %v138_v19 }
  0xfa   :  { %332 = vmatmul.mubr.bf16.vlgmr.msra.gmra.mxu1 %v140_v21 }
 0x1ba   :  { %v246_v23 = vpop.f32.mrf.mxu1 }
 0x1bb   :  { %v247_v24 = vadd.f32 %v286_v22, %v246_v23 }
 0x1bc   :  { %v333_v25 = vpop.f32.mrf.mxu1 }
 0x1bd   :  { %v253_v26 = vmul.f32 0.5, %v247_v24 }
 0x1be   :  { %v249_v27 = vpop.f32.mrf.mxu1 }
 0x1bf   :  { %356 = vtanh.f32 %v253_v26  ;;  %v250_v28 = vadd.f32 %v286_v22, %v249_v27 }
 0x1c0   :  { %v334_v29 = vpop.f32.mrf.mxu1 }
 0x1c1   :  { %v254_v30 = vmul.f32 0.5, %v250_v28 }
 0x1c3   :  { %358 = vtanh.f32 %v254_v30 }
 0x1cc   :  { %v357_v31 = vpop.eup %356 }
 0x1cd   :  { %v257_v32 = vmul.f32 0.5, %v357_v31 }
 0x1cf   :  { %v259_v33 = vadd.f32 0.5, %v257_v32 }
 0x1d0   :  { %v359_v34 = vpop.eup %358 }
 0x1d1   :  { %261 = vst [vmem:[#allocation8] sm:$0xff] %v259_v33  ;;  %v258_v35 = vmul.f32 0.5, %v359_v34 }
 0x1d3   :  { %v260_v36 = vadd.f32 0.5, %v258_v35 }
 0x1d5   :  { %262 = vst [vmem:[#allocation8 + $0x8] sm:$0xff] %v260_v36 }
 0x1d6   :  { %431 = shalt.err (!%p428_p5)
}
 0x1d7   :  { %s454_s12 = smov 128   ;;  %s455_s13 = smov 8  }
 0x1d8   :  { %274 = dma.vmem_to_hbm [thread:$0]  %s269_s11, 256, %s509_s5, [#allocation4], %s454_s12, %s454_s12, %s455_s13  }
 0x1d9   :  { %444 = dma.done.wait [#allocation4], 256  }
 0x1da   :  { %445 = vsyncadd [#allocation4], 4294967040 }
 0x1db   :  { %278 = vsyncpa [#allocation3], 1 }
 0x1dc   :  { %279 = vsyncpa [#allocation6], 1 }
 0x1dd   :  { %280 = vsyncpa [#allocation4], 1 }

</bundles_post_ra>
